<compile_context>
chip_gen: v6e
topology: v6e:2x2x1
jax: 0.10.0
libtpu: 0.0.40
codegen_flags: <defaults>
</compile_context>

<pallas_src>
import jax
import jax.numpy as jnp
import numpy as np
from jax.experimental import pallas as pl
from jax.experimental.pallas import tpu as pltpu

BN_EPS = 1e-5

# packA layout  (f32[24, 256]):
#   rows  0:16  -> W_lin = S @ (w2a * s)      (linear feature-engineering folded)
#   row   16    -> w2a_s row for `ratio`
#   row   17    -> w2a_s row for `wind_and_coolant`
#   row   18    -> b2a * s
#   rows 19:24  -> zero padding
#
# packB layout  (f32[272, 64]):  (MLP1 params zero-padded from 8 -> 64 lanes)
#   rows  0:256 -> w2b * s
#   row   256   -> b2b * s
#   row   257   -> w2c (as a row)
#   row   258   -> combined output bias (b2c + b1c) in col 0
#   row   259   -> w1a * s  (row)
#   row   260   -> b1a * s
#   row   261   -> b1b * s
#   row   262   -> w1c (as a row)
#   row   263   -> zero
#   rows 264:272-> w1b * s


def com_out_temp_kernel(inp_ref, a_ref, b_ref, out_ref):
    inp = inp_ref[...]                        # [TB, 16]  = [x(13) | hp | tph5 | 0]

    # ---- unpack packed parameter slabs (static offsets, weights stay resident) ----
    w_lin     = a_ref[0:16, :]                # [16, 256]
    ratio_row = a_ref[16:17, :]               # [1, 256]
    wac_row   = a_ref[17:18, :]               # [1, 256]
    b2a       = a_ref[18:19, :]               # [1, 256]

    w2b       = b_ref[0:256, :]               # [256, 64]
    b2b       = b_ref[256:257, :]             # [1, 64]
    w2c_row   = b_ref[257:258, :]             # [1, 64]
    bias_row  = b_ref[258:259, :]             # [1, 64]  (b2c + b1c in col 0)
    w1a_row   = b_ref[259:260, :]             # [1, 64]  (cols 8: zero)
    b1a       = b_ref[260:261, :]             # [1, 64]
    b1b       = b_ref[261:262, :]             # [1, 64]
    w1c_row   = b_ref[262:263, :]             # [1, 64]
    w1b       = b_ref[264:272, :]             # [8, 64]

    # ---- nonlinear engineered features (the only ones not folded into W_lin) ----
    hp    = inp[:, 13:14]
    lo    = inp[:, 5:6]
    ratio = jnp.clip(hp / lo, 3.0, 100.0)
    wac   = inp[:, 0:1] * inp[:, 7:8]         # air_temp_before_heat_exchange * heat_coolant_vol
    dcs   = inp[:, 11:12]                     # diff_compressor_speed

    # ---- MLP2: (folded use_x2) -> 256 -> 64  (BN scale folded into weights) ----
    h = jnp.dot(inp, w_lin, preferred_element_type=jnp.float32)     # MXU
    h = jnp.tanh(h + ratio * ratio_row + wac * wac_row + b2a)        # [TB, 256]
    h = jnp.tanh(jnp.dot(h, w2b, preferred_element_type=jnp.float32) + b2b)  # [TB, 64]

    # ---- MLP1: 1 -> 8 -> 8 on the VPU (padded to 64 lanes, no MXU issue) ----
    g = jnp.tanh(dcs * w1a_row + b1a)          # [TB, 64]; cols 8: stay exactly 0
    g2 = b1b + g[:, 0:1] * w1b[0:1, :]
    for i in range(1, 8):                      # unrolled broadcast FMAs
        g2 = g2 + g[:, i:i + 1] * w1b[i:i + 1, :]
    g2 = jnp.tanh(g2)                          # [TB, 64]; cols 8: stay 0

    # ---- both 1-wide heads + output bias as a single fused lane reduce ----
    out = jnp.sum(h * w2c_row + g2 * w1c_row + bias_row, axis=-1, keepdims=True)
    out_ref[...] = out.astype(out_ref.dtype)


def _xavier_uniform(key, fan_in, fan_out):
    bound = float(np.sqrt(6.0 / (fan_in + fan_out)))
    # stored as [in, out] so forward is x @ W
    return jax.random.uniform(key, (fan_in, fan_out), jnp.float32, -bound, bound)


def make_params(key):
    ks = jax.random.split(key, 6)
    return {
        # MLP2: 10 -> 256 -> 64 -> 1
        "w2a": _xavier_uniform(ks[0], 10, 256), "b2a": jnp.zeros((1, 256), jnp.float32),
        "w2b": _xavier_uniform(ks[1], 256, 64), "b2b": jnp.zeros((1, 64), jnp.float32),
        "w2c": _xavier_uniform(ks[2], 64, 1),   "b2c": jnp.zeros((1, 1), jnp.float32),
        # MLP1: 1 -> 8 -> 8 -> 1
        "w1a": _xavier_uniform(ks[3], 1, 8),    "b1a": jnp.zeros((1, 8), jnp.float32),
        "w1b": _xavier_uniform(ks[4], 8, 8),    "b1b": jnp.zeros((1, 8), jnp.float32),
        "w1c": _xavier_uniform(ks[5], 8, 1),    "b1c": jnp.zeros((1, 1), jnp.float32),
    }


def pack_params(params):
    """Fold BN scale + linear feature engineering into the weights and pack into
    two contiguous, (8,128)-friendly f32 slabs."""
    s = float(1.0 / np.sqrt(1.0 + BN_EPS))

    w2a = np.asarray(params["w2a"], np.float32) * s            # [10, 256]
    b2a = np.asarray(params["b2a"], np.float32).reshape(-1) * s
    w2b = np.asarray(params["w2b"], np.float32) * s            # [256, 64]
    b2b = np.asarray(params["b2b"], np.float32).reshape(-1) * s
    w2c = np.asarray(params["w2c"], np.float32)                # [64, 1]
    b2c = float(np.asarray(params["b2c"]).reshape(()))

    w1a = np.asarray(params["w1a"], np.float32) * s            # [1, 8]
    b1a = np.asarray(params["b1a"], np.float32).reshape(-1) * s
    w1b = np.asarray(params["w1b"], np.float32) * s            # [8, 8]
    b1b = np.asarray(params["b1b"], np.float32).reshape(-1) * s
    w1c = np.asarray(params["w1c"], np.float32)                # [8, 1]
    b1c = float(np.asarray(params["b1c"]).reshape(()))

    # Selection matrix: inp=[x(13)|hp|tph5|pad] -> linear columns of use_x2.
    S = np.zeros((16, 10), np.float32)
    S[13, 0] = 1.0                    # hi_pressure
    S[2, 1] = 1.0                     # compressor_speed
    S[4, 2] = 1.0                     # temp_p_h_1_cab_heating
    S[5, 3] = 1.0                     # lo_pressure
    S[3, 4] = 1.0                     # cab_heating_status_act_pos
    S[14, 5] = 1.0                    # temp_p_h_5
    # cols 6 (ratio) and 7 (wind_and_coolant) are nonlinear -> handled in-kernel
    S[10, 8] = 1.0; S[13, 8] = -1.0   # diff_hp = aim_hi_pressure - hi_pressure
    S[5, 9] = 1.0;  S[12, 9] = -1.0   # diff_lp = lo_pressure - aim_lo_pressure

    packA = np.zeros((24, 256), np.float32)
    packA[0:16] = S @ w2a
    packA[16] = w2a[6]
    packA[17] = w2a[7]
    packA[18] = b2a

    packB = np.zeros((272, 64), np.float32)
    packB[0:256] = w2b
    packB[256] = b2b
    packB[257] = w2c[:, 0]
    packB[258, 0] = b2c + b1c
    packB[259, 0:8] = w1a[0]
    packB[260, 0:8] = b1a
    packB[261, 0:8] = b1b
    packB[262, 0:8] = w1c[:, 0]
    packB[264:272, 0:8] = w1b

    return jnp.asarray(packA), jnp.asarray(packB)


def com_out_temp_forward(x, hi_pressure, temp_p_h_5, packA, packB, *, block_b=1024):
    """x: [B,13], hi_pressure: [B,1], temp_p_h_5: [B,1] -> [B,1].

    Batch-tiled: grid=(cdiv(B, TB),) with 'parallel' semantics; the two weight
    slabs (~93 KB total) use a constant index_map and stay resident in VMEM.
    block_b can be raised (v6e) or kept moderate (v7x 64 MiB VMEM) — at f32x16
    per row even 8K-row tiles are only ~0.5 MB double-buffered.
    """
    B = x.shape[0]
    inp = jnp.concatenate(
        [x.astype(jnp.float32),
         hi_pressure[:, 0:1].astype(jnp.float32),   # detach is a no-op for inference
         temp_p_h_5.astype(jnp.float32),
         jnp.zeros((B, 1), jnp.float32)],
        axis=1)                                     # [B, 16]

    tb = B if B <= block_b else block_b             # block_b is a multiple of 8
    grid = (pl.cdiv(B, tb),)

    return pl.pallas_call(
        com_out_temp_kernel,
        out_shape=jax.ShapeDtypeStruct((B, 1), jnp.float32),
        grid=grid,
        in_specs=[
            pl.BlockSpec((tb, 16), lambda i: (i, 0)),        # streamed batch tile
            pl.BlockSpec(packA.shape, lambda i: (0, 0)),     # resident weights
            pl.BlockSpec(packB.shape, lambda i: (0, 0)),     # resident weights
        ],
        out_specs=pl.BlockSpec((tb, 1), lambda i: (i, 0)),
        compiler_params=pltpu.CompilerParams(
            dimension_semantics=("parallel",)),
    )(inp, packA, packB)


def reference_forward(x, hi_pressure, temp_p_h_5, params):
    """Pure-JAX reference mirroring the PyTorch forward (eval-mode BN)."""
    hp = hi_pressure[:, 0:1]
    lo = x[:, 5:6]
    ratio = jnp.clip(hp / lo, 3.0, 100.0)
    wac = x[:, 0:1] * x[:, 7:8]
    diff_hp = x[:, 10:11] - hp
    diff_lp = lo - x[:, 12:13]
    use_x2 = jnp.concatenate(
        [hp, x[:, 2:3], x[:, 4:5], lo, x[:, 3:4], temp_p_h_5, ratio, wac,
         diff_hp, diff_lp], axis=1)
    s = 1.0 / np.sqrt(1.0 + BN_EPS)

    h = jnp.tanh((use_x2 @ params["w2a"] + params["b2a"]) * s)
    h = jnp.tanh((h @ params["w2b"] + params["b2b"]) * s)
    part2 = h @ params["w2c"] + params["b2c"]

    g = jnp.tanh((x[:, 11:12] @ params["w1a"] + params["b1a"]) * s)
    g = jnp.tanh((g @ params["w1b"] + params["b1b"]) * s)
    part1 = g @ params["w1c"] + params["b1c"]
    return part1 + part2


if __name__ == "__main__":
    B, F = 16, 13
    key = jax.random.PRNGKey(0)
    k_x, k_hp, k_t5, k_p = jax.random.split(key, 4)

    # Positive, physically sensible inputs; hi_pressure range exercises both clip bounds.
    x = jax.random.uniform(k_x, (B, F), jnp.float32, 0.5, 5.0)
    hi_pressure = jax.random.uniform(k_hp, (B, 1), jnp.float32, 2.0, 200.0)
    temp_p_h_5 = jax.random.uniform(k_t5, (B, 1), jnp.float32, -10.0, 60.0)

    params = make_params(k_p)
    packA, packB = pack_params(params)

    out = com_out_temp_forward(x, hi_pressure, temp_p_h_5, packA, packB)
    out = jax.block_until_ready(out)

    ref = reference_forward(x, hi_pressure, temp_p_h_5, params)
    # Folding the feature engineering / BN scale into the first-layer weights
    # reassociates f32 sums over O(100)-magnitude pressure terms -> allow ~1e-3.
    np.testing.assert_allclose(np.asarray(out), np.asarray(ref), rtol=1e-3, atol=1e-3)

    print("KERNEL_OK")
</pallas_src>

<mosaic_0001>
module attributes {stable_mosaic.version = 11 : i64} {
  func.func @com_out_temp_kernel(%arg0: i32, %arg1: memref<16x16xf32, #tpu.memory_space<vmem>>, %arg2: memref<24x256xf32, #tpu.memory_space<vmem>>, %arg3: memref<272x64xf32, #tpu.memory_space<vmem>>, %arg4: memref<16x1xf32, #tpu.memory_space<vmem>>) attributes {dimension_semantics = [#tpu.dimension_semantics<parallel>], iteration_bounds = array<i64: 1>, scalar_prefetch = 0 : i64, scratch_operands = 0 : i64, tpu.core_type = #tpu.core_type<tc>, window_params = [{transform_indices = @transform_0, window_bounds = array<i64: 16, 16>}, {pipeline_mode = #tpu.pipeline_mode<synchronous>, transform_indices = @transform_1, window_bounds = array<i64: 24, 256>}, {pipeline_mode = #tpu.pipeline_mode<synchronous>, transform_indices = @transform_2, window_bounds = array<i64: 272, 64>}, {transform_indices = @transform_3, window_bounds = array<i64: 16, 1>}]} {
    %c0 = arith.constant 0 : index
    %c0_0 = arith.constant 0 : index
    %0 = vector.load %arg1[%c0, %c0_0] : memref<16x16xf32, #tpu.memory_space<vmem>>, vector<16x16xf32>
    %c0_1 = arith.constant 0 : index
    %c0_2 = arith.constant 0 : index
    %1 = vector.load %arg2[%c0_1, %c0_2] : memref<24x256xf32, #tpu.memory_space<vmem>>, vector<16x256xf32>
    %c16 = arith.constant 16 : index
    %c0_3 = arith.constant 0 : index
    %2 = vector.load %arg2[%c16, %c0_3] : memref<24x256xf32, #tpu.memory_space<vmem>>, vector<1x256xf32>
    %c17 = arith.constant 17 : index
    %c0_4 = arith.constant 0 : index
    %3 = vector.load %arg2[%c17, %c0_4] : memref<24x256xf32, #tpu.memory_space<vmem>>, vector<1x256xf32>
    %c18 = arith.constant 18 : index
    %c0_5 = arith.constant 0 : index
    %4 = vector.load %arg2[%c18, %c0_5] : memref<24x256xf32, #tpu.memory_space<vmem>>, vector<1x256xf32>
    %c0_6 = arith.constant 0 : index
    %c0_7 = arith.constant 0 : index
    %5 = vector.load %arg3[%c0_6, %c0_7] : memref<272x64xf32, #tpu.memory_space<vmem>>, vector<256x64xf32>
    %c256 = arith.constant 256 : index
    %c0_8 = arith.constant 0 : index
    %6 = vector.load %arg3[%c256, %c0_8] : memref<272x64xf32, #tpu.memory_space<vmem>>, vector<1x64xf32>
    %c257 = arith.constant 257 : index
    %c0_9 = arith.constant 0 : index
    %7 = vector.load %arg3[%c257, %c0_9] : memref<272x64xf32, #tpu.memory_space<vmem>>, vector<1x64xf32>
    %c258 = arith.constant 258 : index
    %c0_10 = arith.constant 0 : index
    %8 = vector.load %arg3[%c258, %c0_10] : memref<272x64xf32, #tpu.memory_space<vmem>>, vector<1x64xf32>
    %c259 = arith.constant 259 : index
    %c0_11 = arith.constant 0 : index
    %9 = vector.load %arg3[%c259, %c0_11] : memref<272x64xf32, #tpu.memory_space<vmem>>, vector<1x64xf32>
    %c260 = arith.constant 260 : index
    %c0_12 = arith.constant 0 : index
    %10 = vector.load %arg3[%c260, %c0_12] : memref<272x64xf32, #tpu.memory_space<vmem>>, vector<1x64xf32>
    %c261 = arith.constant 261 : index
    %c0_13 = arith.constant 0 : index
    %11 = vector.load %arg3[%c261, %c0_13] : memref<272x64xf32, #tpu.memory_space<vmem>>, vector<1x64xf32>
    %c262 = arith.constant 262 : index
    %c0_14 = arith.constant 0 : index
    %12 = vector.load %arg3[%c262, %c0_14] : memref<272x64xf32, #tpu.memory_space<vmem>>, vector<1x64xf32>
    %c264 = arith.constant 264 : index
    %c0_15 = arith.constant 0 : index
    %13 = vector.load %arg3[%c264, %c0_15] : memref<272x64xf32, #tpu.memory_space<vmem>>, vector<8x64xf32>
    %14 = vector.extract_strided_slice %0 {offsets = [0, 13], sizes = [16, 1], strides = [1, 1]} : vector<16x16xf32> to vector<16x1xf32>
    %15 = vector.extract_strided_slice %0 {offsets = [0, 5], sizes = [16, 1], strides = [1, 1]} : vector<16x16xf32> to vector<16x1xf32>
    %16 = arith.divf %14, %15 : vector<16x1xf32>
    %cst = arith.constant 3.000000e+00 : f32
    %cst_16 = arith.constant 1.000000e+02 : f32
    %17 = vector.broadcast %cst : f32 to vector<16x1xf32>
    %18 = arith.maximumf %17, %16 : vector<16x1xf32>
    %19 = vector.broadcast %cst_16 : f32 to vector<16x1xf32>
    %20 = arith.minimumf %19, %18 : vector<16x1xf32>
    %21 = vector.extract_strided_slice %0 {offsets = [0, 0], sizes = [16, 1], strides = [1, 1]} : vector<16x16xf32> to vector<16x1xf32>
    %22 = vector.extract_strided_slice %0 {offsets = [0, 7], sizes = [16, 1], strides = [1, 1]} : vector<16x16xf32> to vector<16x1xf32>
    %23 = arith.mulf %21, %22 : vector<16x1xf32>
    %24 = vector.extract_strided_slice %0 {offsets = [0, 11], sizes = [16, 1], strides = [1, 1]} : vector<16x16xf32> to vector<16x1xf32>
    %cst_17 = arith.constant dense<0.000000e+00> : vector<16x256xf32>
    %25 = tpu.matmul %0, %1, %cst_17 {dimension_numbers = #tpu.dot_dimension_numbers<[1], [0], [0], [1], [0, 0, 1, 1], [], []>} : vector<16x16xf32>, vector<16x256xf32>, vector<16x256xf32> -> vector<16x256xf32>
    %26 = vector.broadcast %20 : vector<16x1xf32> to vector<16x256xf32>
    %27 = vector.broadcast %2 : vector<1x256xf32> to vector<16x256xf32>
    %28 = arith.mulf %26, %27 : vector<16x256xf32>
    %29 = arith.addf %25, %28 : vector<16x256xf32>
    %30 = vector.broadcast %23 : vector<16x1xf32> to vector<16x256xf32>
    %31 = vector.broadcast %3 : vector<1x256xf32> to vector<16x256xf32>
    %32 = arith.mulf %30, %31 : vector<16x256xf32>
    %33 = arith.addf %29, %32 : vector<16x256xf32>
    %34 = vector.broadcast %4 : vector<1x256xf32> to vector<16x256xf32>
    %35 = arith.addf %33, %34 : vector<16x256xf32>
    %36 = math.tanh %35 : vector<16x256xf32>
    %cst_18 = arith.constant dense<0.000000e+00> : vector<16x64xf32>
    %37 = tpu.matmul %36, %5, %cst_18 {dimension_numbers = #tpu.dot_dimension_numbers<[1], [0], [0], [1], [0, 0, 1, 1], [], []>} : vector<16x256xf32>, vector<256x64xf32>, vector<16x64xf32> -> vector<16x64xf32>
    %38 = vector.broadcast %6 : vector<1x64xf32> to vector<16x64xf32>
    %39 = arith.addf %37, %38 : vector<16x64xf32>
    %40 = math.tanh %39 : vector<16x64xf32>
    %41 = vector.broadcast %24 : vector<16x1xf32> to vector<16x64xf32>
    %42 = vector.broadcast %9 : vector<1x64xf32> to vector<16x64xf32>
    %43 = arith.mulf %41, %42 : vector<16x64xf32>
    %44 = vector.broadcast %10 : vector<1x64xf32> to vector<16x64xf32>
    %45 = arith.addf %43, %44 : vector<16x64xf32>
    %46 = math.tanh %45 : vector<16x64xf32>
    %47 = vector.extract_strided_slice %46 {offsets = [0, 0], sizes = [16, 1], strides = [1, 1]} : vector<16x64xf32> to vector<16x1xf32>
    %48 = vector.extract_strided_slice %13 {offsets = [0, 0], sizes = [1, 64], strides = [1, 1]} : vector<8x64xf32> to vector<1x64xf32>
    %49 = vector.broadcast %47 : vector<16x1xf32> to vector<16x64xf32>
    %50 = vector.broadcast %48 : vector<1x64xf32> to vector<16x64xf32>
    %51 = arith.mulf %49, %50 : vector<16x64xf32>
    %52 = vector.broadcast %11 : vector<1x64xf32> to vector<16x64xf32>
    %53 = arith.addf %52, %51 : vector<16x64xf32>
    %54 = vector.extract_strided_slice %46 {offsets = [0, 1], sizes = [16, 1], strides = [1, 1]} : vector<16x64xf32> to vector<16x1xf32>
    %55 = vector.extract_strided_slice %13 {offsets = [1, 0], sizes = [1, 64], strides = [1, 1]} : vector<8x64xf32> to vector<1x64xf32>
    %56 = vector.broadcast %54 : vector<16x1xf32> to vector<16x64xf32>
    %57 = vector.broadcast %55 : vector<1x64xf32> to vector<16x64xf32>
    %58 = arith.mulf %56, %57 : vector<16x64xf32>
    %59 = arith.addf %53, %58 : vector<16x64xf32>
    %60 = vector.extract_strided_slice %46 {offsets = [0, 2], sizes = [16, 1], strides = [1, 1]} : vector<16x64xf32> to vector<16x1xf32>
    %61 = vector.extract_strided_slice %13 {offsets = [2, 0], sizes = [1, 64], strides = [1, 1]} : vector<8x64xf32> to vector<1x64xf32>
    %62 = vector.broadcast %60 : vector<16x1xf32> to vector<16x64xf32>
    %63 = vector.broadcast %61 : vector<1x64xf32> to vector<16x64xf32>
    %64 = arith.mulf %62, %63 : vector<16x64xf32>
    %65 = arith.addf %59, %64 : vector<16x64xf32>
    %66 = vector.extract_strided_slice %46 {offsets = [0, 3], sizes = [16, 1], strides = [1, 1]} : vector<16x64xf32> to vector<16x1xf32>
    %67 = vector.extract_strided_slice %13 {offsets = [3, 0], sizes = [1, 64], strides = [1, 1]} : vector<8x64xf32> to vector<1x64xf32>
    %68 = vector.broadcast %66 : vector<16x1xf32> to vector<16x64xf32>
    %69 = vector.broadcast %67 : vector<1x64xf32> to vector<16x64xf32>
    %70 = arith.mulf %68, %69 : vector<16x64xf32>
    %71 = arith.addf %65, %70 : vector<16x64xf32>
    %72 = vector.extract_strided_slice %46 {offsets = [0, 4], sizes = [16, 1], strides = [1, 1]} : vector<16x64xf32> to vector<16x1xf32>
    %73 = vector.extract_strided_slice %13 {offsets = [4, 0], sizes = [1, 64], strides = [1, 1]} : vector<8x64xf32> to vector<1x64xf32>
    %74 = vector.broadcast %72 : vector<16x1xf32> to vector<16x64xf32>
    %75 = vector.broadcast %73 : vector<1x64xf32> to vector<16x64xf32>
    %76 = arith.mulf %74, %75 : vector<16x64xf32>
    %77 = arith.addf %71, %76 : vector<16x64xf32>
    %78 = vector.extract_strided_slice %46 {offsets = [0, 5], sizes = [16, 1], strides = [1, 1]} : vector<16x64xf32> to vector<16x1xf32>
    %79 = vector.extract_strided_slice %13 {offsets = [5, 0], sizes = [1, 64], strides = [1, 1]} : vector<8x64xf32> to vector<1x64xf32>
    %80 = vector.broadcast %78 : vector<16x1xf32> to vector<16x64xf32>
    %81 = vector.broadcast %79 : vector<1x64xf32> to vector<16x64xf32>
    %82 = arith.mulf %80, %81 : vector<16x64xf32>
    %83 = arith.addf %77, %82 : vector<16x64xf32>
    %84 = vector.extract_strided_slice %46 {offsets = [0, 6], sizes = [16, 1], strides = [1, 1]} : vector<16x64xf32> to vector<16x1xf32>
    %85 = vector.extract_strided_slice %13 {offsets = [6, 0], sizes = [1, 64], strides = [1, 1]} : vector<8x64xf32> to vector<1x64xf32>
    %86 = vector.broadcast %84 : vector<16x1xf32> to vector<16x64xf32>
    %87 = vector.broadcast %85 : vector<1x64xf32> to vector<16x64xf32>
    %88 = arith.mulf %86, %87 : vector<16x64xf32>
    %89 = arith.addf %83, %88 : vector<16x64xf32>
    %90 = vector.extract_strided_slice %46 {offsets = [0, 7], sizes = [16, 1], strides = [1, 1]} : vector<16x64xf32> to vector<16x1xf32>
    %91 = vector.extract_strided_slice %13 {offsets = [7, 0], sizes = [1, 64], strides = [1, 1]} : vector<8x64xf32> to vector<1x64xf32>
    %92 = vector.broadcast %90 : vector<16x1xf32> to vector<16x64xf32>
    %93 = vector.broadcast %91 : vector<1x64xf32> to vector<16x64xf32>
    %94 = arith.mulf %92, %93 : vector<16x64xf32>
    %95 = arith.addf %89, %94 : vector<16x64xf32>
    %96 = math.tanh %95 : vector<16x64xf32>
    %97 = vector.broadcast %7 : vector<1x64xf32> to vector<16x64xf32>
    %98 = arith.mulf %40, %97 : vector<16x64xf32>
    %99 = vector.broadcast %12 : vector<1x64xf32> to vector<16x64xf32>
    %100 = arith.mulf %96, %99 : vector<16x64xf32>
    %101 = arith.addf %98, %100 : vector<16x64xf32>
    %102 = vector.broadcast %8 : vector<1x64xf32> to vector<16x64xf32>
    %103 = arith.addf %101, %102 : vector<16x64xf32>
    %cst_19 = arith.constant dense<0.000000e+00> : vector<16xf32>
    %104 = vector.multi_reduction <add>, %103, %cst_19 [1] : vector<16x64xf32> to vector<16xf32>
    %105 = vector.shape_cast %104 : vector<16xf32> to vector<16x1xf32>
    %c0_20 = arith.constant 0 : index
    %c0_21 = arith.constant 0 : index
    %106 = vector.load %arg4[%c0_20, %c0_21] : memref<16x1xf32, #tpu.memory_space<vmem>>, vector<16x1xf32>
    tpu.vector_store %arg4[%c0_20, %c0_21], %105 {strides = array<i32>} : memref<16x1xf32, #tpu.memory_space<vmem>>, vector<16x1xf32>,
    return
  }
  func.func @transform_0(%arg0: i32) -> (i32, i32) {
    %c0_i32 = arith.constant 0 : i32
    %c0_i32_0 = arith.constant 0 : i32
    return %arg0, %c0_i32 : i32, i32
  }
  func.func @transform_1(%arg0: i32) -> (i32, i32) {
    %c0_i32 = arith.constant 0 : i32
    %c0_i32_0 = arith.constant 0 : i32
    %c0_i32_1 = arith.constant 0 : i32
    return %c0_i32, %c0_i32_0 : i32, i32
  }
  func.func @transform_2(%arg0: i32) -> (i32, i32) {
    %c0_i32 = arith.constant 0 : i32
    %c0_i32_0 = arith.constant 0 : i32
    %c0_i32_1 = arith.constant 0 : i32
    return %c0_i32, %c0_i32_0 : i32, i32
  }
  func.func @transform_3(%arg0: i32) -> (i32, i32) {
    %c0_i32 = arith.constant 0 : i32
    %c0_i32_0 = arith.constant 0 : i32
    return %arg0, %c0_i32 : i32, i32
  }
}

</mosaic_0001>

<bundles_post_ra>
// kernel: tpu_custom_call.1
= control target key start
LH: loop header
LB: loop body
LE: loop exit
PB: predicated region body
PF: predicated region fallthrough
CT: control target
= control target key end

     0   :  { %v623_v2 = vmov 0.0   ;;  %v624_v3 = vmov 0   ;;  %s625_s16 = smov 8   ;;  %s626_s17 = smov 121   ;;  %v627_v7 = vmov 13   ;;  %vm115_vm0 = vcmask 130048   ;;  %s850_s0 = inlined_call_operand.vmem [shape: f32[16,16], index: 0, kind: input, shape index: {}]   ;;  %s851_s1 = inlined_call_operand.vmem [shape: f32[24,256], index: 1, kind: input, shape index: {}]   ;;  %s852_s2 = inlined_call_operand.vmem [shape: f32[272,64], index: 2, kind: input, shape index: {}]   ;;  %s853_s3 = inlined_call_operand.vmem [shape: f32[16,1], index: 3, kind: output, shape index: {}]  }
   0x1   :  { %v659_v0 = vld [vmem:[%s850_s0] sm:$0xff]  ;;  %v19_v1 = vld [vmem:[%s851_s1 + $0x18] sm:$0xff]  ;;  %184 = vmatprep.mubr.f32.mxu0 %v623_v2  ;;  %581 = vset.pattern.permute.xlu1 %v624_v3  ;;  %v18_v4 = vld [vmem:[%s851_s1 + $0x10] sm:$0xff]  ;;  %v628_v45 = vmov 11   ;;  %v101_v56 = vlaneseq  ;;  %vm504_vm1 = vcmask 523264   ;;  %vm511_vm2 = vcmask 7168  }
   0x2   :  { %68 = vrot.lane.b32.xlu0 %v659_v0, %s625_s16  ;;  %82 = vrot.lane.b32.xlu1 %v659_v0, %s626_s17  ;;  %v17_v5 = vld [vmem:[%s851_s1 + $0x8] sm:$0xff]  ;;  %v16_v8 = vld [vmem:[%s851_s1] sm:$0xff] }
   0x3   :  { %v676_v6 = vld [vmem:[%s850_s0 + $0x8] sm:$0xff]  ;;  %148 = vmatprep.subr.mxu0 %v19_v1  ;;  %582 = vset.pattern.permute.xlu0 %v627_v7  ;;  %v57_v9 = vld [vmem:[%s852_s2 + $0xf8] sm:$0xff]  ;;  %v56_v11 = vld [vmem:[%s852_s2 + $0xf0] sm:$0xff]  ;;  %v789_v57 = vshrl.u32 %v101_v56, 7 }
   0x4   :  { %149 = vmatpush1.msra.mxu0 %v18_v4  ;;  %v41_v10 = vld [vmem:[%s852_s2 + $0x78] sm:$0xff]  ;;  %530 = vmatprep.subr.mxu1 %v57_v9  ;;  %v40_v12 = vld [vmem:[%s852_s2 + $0x70] sm:$0xff]  ;;  %v55_v13 = vld [vmem:[%s852_s2 + $0xe8] sm:$0xff] }
   0x5   :  { %150 = vmatprep.subr.mxu0 %v17_v5  ;;  %531 = vmatpush3.msra.mxu1 %v41_v10  ;;  %v39_v14 = vld [vmem:[%s852_s2 + $0x68] sm:$0xff]  ;;  %v54_v15 = vld [vmem:[%s852_s2 + $0xe0] sm:$0xff]  ;;  %v53_v17 = vld [vmem:[%s852_s2 + $0xd8] sm:$0xff]  ;;  %v792_v58 = vsub.s32 0, %v789_v57  ;;  %v795_v59 = vsub.s32 1, %v789_v57 }
   0x6   :  { %70 = vrot.lane.b32.xlu0 %v676_v6, %s625_s16  ;;  %84 = vrot.lane.b32.xlu1 %v676_v6, %s626_s17  ;;  %v38_v16 = vld [vmem:[%s852_s2 + $0x60] sm:$0xff]  ;;  %v37_v24 = vld [vmem:[%s852_s2 + $0x58] sm:$0xff] }
   0x7   :  { %151 = vmatpush1.msra.mxu0 %v16_v8  ;;  %532 = vmatprep.subr.mxu1 %v56_v11  ;;  %v52_v26 = vld [vmem:[%s852_s2 + $0xd0] sm:$0xff]  ;;  %v51_v32 = vld [vmem:[%s852_s2 + $0xc8] sm:$0xff]  ;;  %v50_v35 = vld [vmem:[%s852_s2 + $0xc0] sm:$0xff] }
   0x8   :  { %521 = vmatmul.mubr.msk.f32.vlgmr.msra.gmra.mxu0 %vm115_vm0, %v659_v0  ;;  %533 = vmatpush3.msra.mxu1 %v40_v12  ;;  %v36_v28 = vld [vmem:[%s852_s2 + $0x50] sm:$0xff]  ;;  %v35_v33 = vld [vmem:[%s852_s2 + $0x48] sm:$0xff]  ;;  %v34_v37 = vld [vmem:[%s852_s2 + $0x40] sm:$0xff] }
   0x9   :  { %190 = vmatprep.mubr.f32.mxu0 %v623_v2  ;;  %534 = vmatprep.subr.mxu1 %v55_v13  ;;  %v49_v39 = vld [vmem:[%s852_s2 + $0xb8] sm:$0xff]  ;;  %v48_v41 = vld [vmem:[%s852_s2 + $0xb0] sm:$0xff]  ;;  %v47_v43 = vld [vmem:[%s852_s2 + $0xa8] sm:$0xff] }
   0xa   :  { %535 = vmatpush3.msra.mxu1 %v39_v14  ;;  %v33_v40 = vld [vmem:[%s852_s2 + $0x38] sm:$0xff]  ;;  %v32_v42 = vld [vmem:[%s852_s2 + $0x30] sm:$0xff]  ;;  %v31_v44 = vld [vmem:[%s852_s2 + $0x28] sm:$0xff] }
   0xb   :  { %536 = vmatprep.subr.mxu1 %v54_v15  ;;  %v46_v46 = vld [vmem:[%s852_s2 + $0xa0] sm:$0xff]  ;;  %v45_v48 = vld [vmem:[%s852_s2 + $0x98] sm:$0xff]  ;;  %v44_v50 = vld [vmem:[%s852_s2 + $0x90] sm:$0xff] }
   0xc   :  { %522 = vmatmul.mubr.msk.f32.gmra.mxu0 %vm115_vm0, %v676_v6  ;;  %537 = vmatpush3.msra.mxu1 %v38_v16  ;;  %v30_v47 = vld [vmem:[%s852_s2 + $0x20] sm:$0xff]  ;;  %v29_v49 = vld [vmem:[%s852_s2 + $0x18] sm:$0xff]  ;;  %v28_v51 = vld [vmem:[%s852_s2 + $0x10] sm:$0xff] }
   0xd   :  { %538 = vmatprep.subr.mxu1 %v53_v17  ;;  %v43_v52 = vld [vmem:[%s852_s2 + $0x88] sm:$0xff]  ;;  %v42_v54 = vld [vmem:[%s852_s2 + $0x80] sm:$0xff] }
   0xe   :  { %539 = vmatpush3.msra.mxu1 %v37_v24  ;;  %v27_v53 = vld [vmem:[%s852_s2 + $0x8] sm:$0xff]  ;;  %v26_v55 = vld [vmem:[%s852_s2] sm:$0xff] }
   0xf   :  { %540 = vmatprep.subr.mxu1 %v52_v26  ;;  %v518_v61 = vld [vmem:[%s851_s1 + $0x20] ss:$8 sm:$0x3]  ;;  %v519_v62 = vld [vmem:[%s851_s1 + $0x21] ss:$8 sm:$0x3] }
  0x10   :  { %541 = vmatpush3.msra.mxu1 %v36_v28  ;;  %v104_v63 = vrot.slane %v518_v61, %v792_v58  ;;  %v215_v4 = vrot.slane %v519_v62, %v795_v59  ;;  %v520_v5 = vld [vmem:[%s851_s1 + $0x22] ss:$8 sm:$0x3]  ;;  %v524_v28 = vld [vmem:[%s852_s2 + $0x103] ss:$0 sm:$0xff] }
  0x11   :  { %542 = vmatprep.subr.mxu1 %v51_v32  ;;  %v230_v10 = vrot.slane %v520_v5, %v792_v58  ;;  %v234_v11 = vrot.slane %v520_v5, %v795_v59  ;;  %v525_v32 = vld [vmem:[%s852_s2 + $0x104] ss:$0 sm:$0xff]  ;;  %v412_v5 = vsub.s32 3, %v789_v57 }
  0x12   :  { %543 = vmatpush3.msra.mxu1 %v35_v33 }
  0x13   :  { %544 = vmatprep.subr.mxu1 %v50_v35 }
  0x14   :  { %545 = vmatpush3.msra.mxu1 %v34_v37 }
  0x15   :  { %546 = vmatprep.subr.mxu1 %v49_v39 }
  0x16   :  { %547 = vmatpush3.msra.mxu1 %v33_v40 }
  0x17   :  { %548 = vmatprep.subr.mxu1 %v48_v41 }
  0x18   :  { %549 = vmatpush3.msra.mxu1 %v32_v42 }
  0x19   :  { %550 = vmatprep.subr.mxu1 %v47_v43 }
  0x1a   :  { %551 = vmatpush3.msra.mxu1 %v31_v44 }
  0x1b   :  { %552 = vmatprep.subr.mxu1 %v46_v46 }
  0x1c   :  { %553 = vmatpush3.msra.mxu1 %v30_v47  ;;  %v629_v47 = vmov 1  }
  0x1d   :  { %554 = vmatprep.subr.mxu1 %v45_v48  ;;  %v630_v48 = vmov 2  }
  0x1e   :  { %555 = vmatpush3.msra.mxu1 %v29_v49  ;;  %v631_v49 = vmov 4  }
  0x1f   :  { %556 = vmatprep.subr.mxu1 %v44_v50  ;;  %v632_v50 = vmov 3  }
  0x20   :  { %557 = vmatpush3.msra.mxu1 %v28_v51  ;;  %v633_v51 = vmov 5  }
  0x21   :  { %558 = vmatprep.subr.mxu1 %v43_v52  ;;  %v634_v52 = vmov 7  }
  0x22   :  { %559 = vmatpush3.msra.mxu1 %v27_v53  ;;  %v635_v53 = vmov 6  }
  0x23   :  { %560 = vmatprep.subr.mxu1 %v42_v54 }
  0x24   :  { %561 = vmatpush3.msra.mxu1 %v26_v55 }
  0x74   :  { %v69_v18 = vpop.permute.xlu0 %68  ;;  %v83_v19 = vpop.permute.xlu1 %82 }
  0x75   :  { %599 = vrcp.f32 %v69_v18  ;;  %v88_v20 = vmul.f32 %v83_v19, %v659_v0 }
  0x77   :  { %199 = vperm.xlu1 %581, %v88_v20  }
  0x78   :  { %v71_v21 = vpop.permute.xlu0 %70  ;;  %v85_v30 = vpop.permute.xlu1 %84 }
  0x79   :  { %601 = vrcp.f32 %v71_v21  ;;  %v89_v36 = vmul.f32 %v85_v30, %v676_v6 }
  0x7b   :  { %583 = vset.pattern.permute.xlu1 %v627_v7 }
  0x82   :  { %v600_v22 = vpop.eup %599 }
  0x83   :  { %v75_v23 = vmul.f32 %v600_v22, %v659_v0 }
  0x85   :  { %v78_v25 = vmax.f32 %v75_v23, 3.0 }
  0x86   :  { %v602_v27 = vpop.eup %601 }
  0x87   :  { %v80_v29 = vmin.f32 %v78_v25, 100.0  ;;  %v77_v31 = vmul.f32 %v602_v27, %v676_v6 }
  0x89   :  { %92 = vperm.xlu0 %582, %v80_v29   ;;  %v79_v34 = vmax.f32 %v77_v31, 3.0 }
  0x8b   :  { %v81_v38 = vmin.f32 %v79_v34, 100.0 }
  0x8d   :  { %97 = vperm.xlu1 %583, %v81_v38   ;;  %584 = vset.pattern.permute.xlu0 %v624_v3 }
  0x8e   :  { %204 = vperm.xlu0 %584, %v89_v36  }
  0x91   :  { %585 = vset.pattern.permute.xlu1 %v628_v45 }
  0x92   :  { %327 = vperm.xlu1 %585, %v659_v0   ;;  %v108_v0 = vrot.slane %v518_v61, %v795_v59 }
  0x96   :  { %331 = vperm.xlu1 %585, %v676_v6  }
  0x9a   :  { %586 = vset.pattern.permute.xlu1 %v624_v3  ;;  %v211_v3 = vrot.slane %v519_v62, %v792_v58 }
  0xc8   :  { %v186_v60 = vpop.f32.mrf.mxu0 }
  0xca   :  { %v188_v2 = vpop.f32.mrf.mxu0 }
  0xcc   :  { %v192_v9 = vpop.f32.mrf.mxu0 }
  0xce   :  { %v194_v22 = vpop.f32.mrf.mxu0 }
  0xf2   :  { %v200_v1 = vpop.permute.xlu1 %199 }
  0xf3   :  { %v218_v12 = vmul.f32 %v211_v3, %v200_v1  ;;  %v219_v13 = vmul.f32 %v215_v4, %v200_v1 }
 0x104   :  { %v93_v6 = vpop.permute.xlu0 %92 }
 0x105   :  { %v111_v7 = vmul.f32 %v104_v63, %v93_v6  ;;  %v112_v8 = vmul.f32 %v108_v0, %v93_v6 }
 0x107   :  { %v187_v14 = vadd.f32 %v186_v60, %v111_v7  ;;  %v189_v15 = vadd.f32 %v188_v2, %v112_v8  ;;  %v396_v2 = vsub.s32 2, %v789_v57 }
 0x108   :  { %v98_v16 = vpop.permute.xlu1 %97 }
 0x109   :  { %v222_v17 = vadd.f32 %v218_v12, %v187_v14  ;;  %v223_v18 = vadd.f32 %v219_v13, %v189_v15  ;;  %v113_v19 = vmul.f32 %v104_v63, %v98_v16  ;;  %v114_v20 = vmul.f32 %v108_v0, %v98_v16  ;;  %v205_v21 = vpop.permute.xlu0 %204  ;;  %v65_v63 = vld [vmem:[%s852_s2 + $0x108] sm:$0xff] }
 0x10a   :  { %v220_v23 = vmul.f32 %v211_v3, %v205_v21  ;;  %v221_v24 = vmul.f32 %v215_v4, %v205_v21  ;;  %v361_v1 = vrot.slane %v65_v63, %v792_v58  ;;  %v381_v4 = vrot.slane %v65_v63, %v795_v59 }
 0x10b   :  { %v193_v25 = vadd.f32 %v192_v9, %v113_v19  ;;  %v195_v26 = vadd.f32 %v194_v22, %v114_v20  ;;  %v237_v27 = vadd.f32 %v230_v10, %v222_v17  ;;  %v238_v29 = vadd.f32 %v234_v11, %v223_v18  ;;  %v526_v9 = vld [vmem:[%s852_s2 + $0x105] ss:$0 sm:$0xff] }
 0x10c   :  { %v397_v8 = vrot.slane %v65_v63, %v396_v2  ;;  %v413_v13 = vrot.slane %v65_v63, %v412_v5  ;;  %v444_v21 = vsub.s32 5, %v789_v57  ;;  %v460_v22 = vsub.s32 6, %v789_v57 }
 0x10d   :  { %v224_v30 = vadd.f32 %v220_v23, %v193_v25  ;;  %v225_v31 = vadd.f32 %v221_v24, %v195_v26  ;;  %603 = vtanh.f32 %v237_v27  ;;  %v328_v33 = vpop.permute.xlu1 %327 }
 0x10e   :  { %v338_v34 = vmul.f32 %v524_v28, %v328_v33  ;;  %605 = vtanh.f32 %v238_v29  ;;  %v445_v29 = vrot.slane %v65_v63, %v444_v21 }
 0x10f   :  { %v239_v35 = vadd.f32 %v230_v10, %v224_v30  ;;  %v240_v36 = vadd.f32 %v234_v11, %v225_v31  ;;  %v428_v11 = vsub.s32 4, %v789_v57  ;;  %v461_v30 = vrot.slane %v65_v63, %v460_v22 }
 0x110   :  { %v344_v37 = vadd.f32 %v525_v32, %v338_v34 }
 0x111   :  { %607 = vtanh.f32 %v239_v35  ;;  %v332_v38 = vpop.permute.xlu1 %331  ;;  %v429_v59 = vrot.slane %v65_v63, %v428_v11 }
 0x112   :  { %609 = vtanh.f32 %v344_v37  ;;  %v339_v39 = vmul.f32 %v524_v28, %v332_v38 }
 0x113   :  { %611 = vtanh.f32 %v240_v36 }
 0x114   :  { %v345_v40 = vadd.f32 %v525_v32, %v339_v39  ;;  %v476_v32 = vsub.s32 7, %v789_v57 }
 0x116   :  { %613 = vtanh.f32 %v345_v40  ;;  %v477_v40 = vrot.slane %v65_v63, %v476_v32 }
 0x11a   :  { %v604_v41 = vpop.eup %603 }
 0x11b   :  { %v606_v42 = vpop.eup %605 }
 0x11c   :  { %313 = vmatprep.mubr.f32.mxu1 %v606_v42 }
 0x11d   :  { %314 = vmatmul.mubr.f32.vlgmr.msra.gmra.mxu1 %v604_v41 }
 0x11e   :  { %v608_v43 = vpop.eup %607 }
 0x11f   :  { %v610_v44 = vpop.eup %609 }
 0x120   :  { %v612_v45 = vpop.eup %611  ;;  %350 = vperm.xlu0 %584, %v610_v44  }
 0x121   :  { %318 = vmatprep.mubr.f32.mxu1 %v612_v45 }
 0x122   :  { %319 = vmatmul.mubr.f32.gmra.mxu1 %v608_v43 }
 0x123   :  { %v614_v46 = vpop.eup %613 }
 0x124   :  { %587 = vset.pattern.permute.xlu0 %v629_v47  ;;  %355 = vperm.xlu1 %586, %v614_v46  }
 0x125   :  { %371 = vperm.xlu0 %587, %v610_v44  }
 0x128   :  { %588 = vset.pattern.permute.xlu1 %v629_v47 }
 0x129   :  { %590 = vset.pattern.permute.xlu0 %v630_v48  ;;  %375 = vperm.xlu1 %588, %v614_v46  }
 0x12a   :  { %391 = vperm.xlu0 %590, %v614_v46  }
 0x12d   :  { %589 = vset.pattern.permute.xlu1 %v630_v48 }
 0x12e   :  { %592 = vset.pattern.permute.xlu0 %v631_v49  ;;  %387 = vperm.xlu1 %589, %v610_v44  }
 0x12f   :  { %419 = vperm.xlu0 %592, %v610_v44  }
 0x132   :  { %591 = vset.pattern.permute.xlu1 %v632_v50 }
 0x133   :  { %595 = vset.pattern.permute.xlu0 %v633_v51  ;;  %403 = vperm.xlu1 %591, %v610_v44  }
 0x134   :  { %439 = vperm.xlu0 %595, %v614_v46  }
 0x137   :  { %407 = vperm.xlu1 %591, %v614_v46  }
 0x138   :  { %597 = vset.pattern.permute.xlu0 %v634_v52 }
 0x139   :  { %467 = vperm.xlu0 %597, %v610_v44  }
 0x13b   :  { %593 = vset.pattern.permute.xlu1 %v631_v49 }
 0x13c   :  { %423 = vperm.xlu1 %593, %v614_v46  }
 0x140   :  { %594 = vset.pattern.permute.xlu1 %v633_v51 }
 0x141   :  { %435 = vperm.xlu1 %594, %v610_v44  }
 0x145   :  { %596 = vset.pattern.permute.xlu1 %v635_v53  ;;  %v523_v53 = vld [vmem:[%s852_s2 + $0x100] ss:$0 sm:$0xff] }
 0x146   :  { %451 = vperm.xlu1 %596, %v610_v44  }
 0x14a   :  { %455 = vperm.xlu1 %596, %v614_v46  }
 0x14e   :  { %598 = vset.pattern.permute.xlu1 %v634_v52 }
 0x14f   :  { %471 = vperm.xlu1 %598, %v614_v46  }
 0x19b   :  { %v351_v61 = vpop.permute.xlu0 %350 }
 0x19c   :  { %v362_v7 = vmul.f32 %v361_v1, %v351_v61 }
 0x19e   :  { %v368_v14 = vadd.f32 %v526_v9, %v362_v7 }
 0x19f   :  { %v356_v54 = vpop.permute.xlu1 %355 }
 0x1a0   :  { %v372_v0 = vpop.permute.xlu0 %371  ;;  %v363_v10 = vmul.f32 %v361_v1, %v356_v54 }
 0x1a1   :  { %v382_v12 = vmul.f32 %v381_v4, %v372_v0 }
 0x1a2   :  { %v369_v16 = vadd.f32 %v526_v9, %v363_v10 }
 0x1a3   :  { %v384_v19 = vadd.f32 %v382_v12, %v368_v14 }
 0x1a4   :  { %v376_v55 = vpop.permute.xlu1 %375 }
 0x1a5   :  { %v392_v6 = vpop.permute.xlu0 %391  ;;  %v383_v17 = vmul.f32 %v381_v4, %v376_v55  ;;  %v528_v4 = vld [vmem:[%s852_s2 + $0x106] ss:$0 sm:$0xff] }
 0x1a6   :  { %v399_v26 = vmul.f32 %v397_v8, %v392_v6 }
 0x1a7   :  { %v385_v25 = vadd.f32 %v383_v17, %v369_v16 }
 0x1a9   :  { %v388_v56 = vpop.permute.xlu1 %387  ;;  %v401_v34 = vadd.f32 %v399_v26, %v385_v25 }
 0x1aa   :  { %v398_v15 = vmul.f32 %v397_v8, %v388_v56  ;;  %v420_v18 = vpop.permute.xlu0 %419  ;;  %v529_v8 = vld [vmem:[%s852_s2 + $0x102] ss:$0 sm:$0xff] }
 0x1ab   :  { %v430_v27 = vmul.f32 %v429_v59, %v420_v18 }
 0x1ac   :  { %v400_v23 = vadd.f32 %v398_v15, %v384_v19 }
 0x1ae   :  { %v404_v60 = vpop.permute.xlu1 %403 }
 0x1af   :  { %v414_v20 = vmul.f32 %v413_v13, %v404_v60  ;;  %v440_v31 = vpop.permute.xlu0 %439 }
 0x1b0   :  { %v447_v48 = vmul.f32 %v445_v29, %v440_v31 }
 0x1b1   :  { %v416_v28 = vadd.f32 %v414_v20, %v400_v23 }
 0x1b2   :  { %v408_v62 = vpop.permute.xlu1 %407 }
 0x1b3   :  { %v415_v35 = vmul.f32 %v413_v13, %v408_v62  ;;  %v432_v36 = vadd.f32 %v430_v27, %v416_v28 }
 0x1b4   :  { %v468_v43 = vpop.permute.xlu0 %467 }
 0x1b5   :  { %v417_v42 = vadd.f32 %v415_v35, %v401_v34  ;;  %v478_v46 = vmul.f32 %v477_v40, %v468_v43 }
 0x1b7   :  { %v424_v3 = vpop.permute.xlu1 %423 }
 0x1b8   :  { %v431_v39 = vmul.f32 %v429_v59, %v424_v3  ;;  %v527_v3 = vld [vmem:[%s852_s2 + $0x101] ss:$0 sm:$0xff] }
 0x1ba   :  { %v433_v45 = vadd.f32 %v431_v39, %v417_v42 }
 0x1bc   :  { %v436_v58 = vpop.permute.xlu1 %435  ;;  %v449_v57 = vadd.f32 %v447_v48, %v433_v45 }
 0x1bd   :  { %v446_v33 = vmul.f32 %v445_v29, %v436_v58 }
 0x1bf   :  { %v448_v41 = vadd.f32 %v446_v33, %v432_v36 }
 0x1c1   :  { %v452_v24 = vpop.permute.xlu1 %451 }
 0x1c2   :  { %v462_v37 = vmul.f32 %v461_v30, %v452_v24 }
 0x1c4   :  { %v464_v44 = vadd.f32 %v462_v37, %v448_v41 }
 0x1c5   :  { %v456_v38 = vpop.permute.xlu1 %455 }
 0x1c6   :  { %v463_v49 = vmul.f32 %v461_v30, %v456_v38  ;;  %v480_v51 = vadd.f32 %v478_v46, %v464_v44 }
 0x1c8   :  { %v465_v56 = vadd.f32 %v463_v49, %v449_v57  ;;  %615 = vtanh.f32 %v480_v51 }
 0x1ca   :  { %v472_v47 = vpop.permute.xlu1 %471 }
 0x1cb   :  { %v479_v52 = vmul.f32 %v477_v40, %v472_v47 }
 0x1cd   :  { %v481_v62 = vadd.f32 %v479_v52, %v465_v56 }
 0x1d5   :  { %v616_v2 = vpop.eup %615 }
 0x1d6   :  { %v494_v7 = vmul.f32 %v616_v2, %v528_v4 }
 0x1dd   :  { %v562_v50 = vpop.f32.mrf.mxu1 }
 0x1df   :  { %v563_v54 = vpop.f32.mrf.mxu1 }
 0x1e0   :  { %v564_v55 = vadd.f32 %v563_v54, %v562_v50 }
 0x1e2   :  { %v316_v60 = vadd.f32 %v564_v55, %v523_v53  ;;  %v565_v61 = vpop.f32.mrf.mxu1 }
 0x1e4   :  { %617 = vtanh.f32 %v316_v60  ;;  %v566_v63 = vpop.f32.mrf.mxu1 }
 0x1e5   :  { %v567_v0 = vadd.f32 %v566_v63, %v565_v61  ;;  %619 = vtanh.f32 %v481_v62 }
 0x1e7   :  { %v321_v1 = vadd.f32 %v567_v0, %v523_v53 }
 0x1e9   :  { %621 = vtanh.f32 %v321_v1 }
 0x1f1   :  { %v618_v5 = vpop.eup %617 }
 0x1f2   :  { %v488_v6 = vmul.f32 %v618_v5, %v527_v3  ;;  %v620_v9 = vpop.eup %619 }
 0x1f3   :  { %v495_v58 = vmul.f32 %v620_v9, %v528_v4 }
 0x1f4   :  { %v496_v10 = vadd.f32 %v494_v7, %v488_v6 }
 0x1f6   :  { %v622_v11 = vpop.eup %621  ;;  %v502_v12 = vadd.f32 %v529_v8, %v496_v10 }
 0x1f7   :  { %v489_v13 = vmul.f32 %v622_v11, %v527_v3 }
 0x1f8   :  { %v505_v14 = vsel %vm504_vm1, %v502_v12, 0.0 }
 0x1f9   :  { %506 = vadd.xlane.f32.xlu1 %v505_v14  ;;  %v497_v15 = vadd.f32 %v495_v58, %v489_v13 }
 0x1fb   :  { %v503_v16 = vadd.f32 %v529_v8, %v497_v15 }
 0x1fd   :  { %v508_v17 = vsel %vm504_vm1, %v503_v16, 0.0 }
 0x1fe   :  { %509 = vadd.xlane.f32.xlu0 %v508_v17 }
 0x282   :  { %v507_v59 = vpop.xlane.xlu1 %506 }
 0x283   :  { %512 = vst.msk [vmem:[%s853_s3] sm:$0xff] %vm511_vm2, %v507_v59 }
 0x287   :  { %v510_v18 = vpop.xlane.xlu0 %509 }
 0x288   :  { %513 = vst.msk [vmem:[%s853_s3 + $0x8] sm:$0xff] %vm511_vm2, %v510_v18 }

</bundles_post_ra>
